<compile_context>
chip_gen: v6e
topology: v6e:2x2x1
jax: 0.10.0
libtpu: 0.0.40
codegen_flags: <defaults>
</compile_context>

<pallas_src>
import functools

import jax
import jax.numpy as jnp
from jax.experimental import pallas as pl
from jax.experimental.pallas import tpu as pltpu


def _round_up(x: int, m: int) -> int:
    return ((x + m - 1) // m) * m


def _linear_kernel_single_k(x_ref, w_ref, b_ref, o_ref):
    # Whole K fits one tile: no accumulator scratch, bias folded into the one store.
    o_ref[...] = (
        jnp.dot(x_ref[...], w_ref[...], preferred_element_type=jnp.float32)
        + b_ref[...]
    ).astype(o_ref.dtype)


def _linear_kernel_multi_k(x_ref, w_ref, b_ref, o_ref, acc_ref):
    # x_ref  : (tb, tk)  activation tile (already in compute dtype)
    # w_ref  : (tk, tc)  pre-transposed / pre-cast weight tile
    # b_ref  : (1,  tc)  f32 bias tile (broadcasts over rows)
    # o_ref  : (tb, tc)  output tile (written only on last K step)
    # acc_ref: (tb, tc)  f32 VMEM accumulator, resident across the K axis
    k = pl.program_id(2)
    nk = pl.num_programs(2)
    part = jnp.dot(x_ref[...], w_ref[...], preferred_element_type=jnp.float32)

    @pl.when(k == 0)
    def _():
        acc_ref[...] = part                      # no zero-init + add round trip

    @pl.when(jnp.logical_and(k > 0, k < nk - 1))
    def _():
        acc_ref[...] += part

    @pl.when(k == nk - 1)
    def _():
        # Fold the final partial product + bias into the epilogue store.
        o_ref[...] = (acc_ref[...] + part + b_ref[...]).astype(o_ref.dtype)


def init_classifier_params(weight, bias, *,
                           compute_dtype=jnp.bfloat16,
                           block_c=1024, block_k=512,
                           split_c_for_megacore=True):
    """One-time parameter preparation (transpose + pad + cast).

    weight : [num_classes, in_dim]  (torch nn.Linear layout)
    bias   : [num_classes]
    compute_dtype : dtype streamed from HBM into the MXU (accumulation is f32).
    """
    C, K = weight.shape
    assert bias.shape == (C,), bias.shape

    c_pad = _round_up(C, 128)
    k_pad = _round_up(K, 128)
    tc = min(block_c, c_pad)
    tk = min(block_k, k_pad)
    # v7x has 2 TensorCores: keep the class axis splittable (>=2 tiles) when C is
    # big enough, so a small-batch call (single batch tile) still has a shardable
    # "parallel" grid axis. Harmless on v5e/v6e (1 TC).
    if split_c_for_megacore and tc == c_pad and c_pad >= 256:
        tc = max(128, _round_up(c_pad // 2, 128))

    Cp = _round_up(c_pad, tc)
    Kp = _round_up(k_pad, tk)

    # Pre-transpose, pre-pad, pre-cast -> no per-call HBM passes over the weight.
    w_t = jnp.asarray(weight).T.astype(compute_dtype)            # [K, C]
    w_t = jnp.pad(w_t, ((0, Kp - K), (0, Cp - C)))               # [Kp, Cp]
    b2d = jnp.pad(jnp.asarray(bias, jnp.float32).reshape(1, C),
                  ((0, 0), (0, Cp - C)))                         # [1, Cp] f32

    return dict(weight_t=w_t, bias2d=b2d, in_dim=K, num_classes=C,
                tc=tc, tk=tk, Kp=Kp, Cp=Cp, compute_dtype=compute_dtype)


def classifier_forward(features, params, *,
                       block_b=512,
                       out_dtype=None,
                       weight_buffers=2,
                       use_pallas=None,
                       vmem_limit_bytes=None):
    """Linear forward: features @ W^T + b, using init-time prepared `params`."""
    B, K = features.shape
    assert K == params["in_dim"], (K, params["in_dim"])
    C = params["num_classes"]
    w_t, b2d = params["weight_t"], params["bias2d"]
    Kp, Cp = params["Kp"], params["Cp"]
    tc, tk = params["tc"], params["tk"]
    compute_dtype = params["compute_dtype"]
    out_dtype = out_dtype or features.dtype

    # Tiny problems: a fused XLA dot beats one padded MXU tile + grid-step overhead.
    if use_pallas is None:
        use_pallas = (B * K * C) >= (128 * 128 * 128)
    if not use_pallas:
        out = features @ w_t[:K, :C] + b2d[0, :C]
        return out.astype(out_dtype)

    tb = block_b if B >= block_b else _round_up(B, 8)
    Bp = _round_up(B, tb)

    # Cast activations once in the wrapper so the kernel streams compute_dtype.
    x = features.astype(compute_dtype)
    if (Bp, Kp) != (B, K):
        x = jnp.pad(x, ((0, Bp - B), (0, Kp - K)))

    grid = (Bp // tb, Cp // tc, Kp // tk)
    nk = grid[2]

    # Optional deeper buffering on the weight stream (small-batch, big-C heads).
    w_spec_kwargs = {}
    if weight_buffers != 2 and grid[1] * grid[2] > 1:
        w_spec_kwargs["pipeline_mode"] = pl.Buffered(weight_buffers)

    in_specs = [
        pl.BlockSpec((tb, tk), lambda i, j, k: (i, k)),                 # activations
        pl.BlockSpec((tk, tc), lambda i, j, k: (k, j), **w_spec_kwargs),  # weight [K, C]
        pl.BlockSpec((1, tc), lambda i, j, k: (0, j)),                  # bias
    ]
    out_spec = pl.BlockSpec((tb, tc), lambda i, j, k: (i, j))

    if nk == 1:
        kernel = _linear_kernel_single_k
        scratch = []
    else:
        kernel = _linear_kernel_multi_k
        scratch = [pltpu.VMEM((tb, tc), jnp.float32)]

    out = pl.pallas_call(
        kernel,
        out_shape=jax.ShapeDtypeStruct((Bp, Cp), out_dtype),
        grid_spec=pltpu.PrefetchScalarGridSpec(
            num_scalar_prefetch=0,
            grid=grid,
            in_specs=in_specs,
            out_specs=out_spec,
            scratch_shapes=scratch),
        compiler_params=pltpu.CompilerParams(
            dimension_semantics=("parallel", "parallel", "arbitrary"),
            vmem_limit_bytes=vmem_limit_bytes),
    )(x, w_t, b2d)

    if (Bp, Cp) != (B, C):
        out = out[:B, :C]
    return out


if __name__ == "__main__":
    # Small shapes consistent with the module: batch=8, in_dim=32, num_classes=16.
    B, IN_DIM, NUM_CLASSES = 8, 32, 16

    key = jax.random.PRNGKey(0)
    k_x, k_w, k_b = jax.random.split(key, 3)

    # nn.Linear-style init: uniform(-1/sqrt(in_dim), 1/sqrt(in_dim)).
    bound = 1.0 / jnp.sqrt(jnp.float32(IN_DIM))
    weight = jax.random.uniform(k_w, (NUM_CLASSES, IN_DIM), jnp.float32, -bound, bound)
    bias = jax.random.uniform(k_b, (NUM_CLASSES,), jnp.float32, -bound, bound)
    features = jax.random.normal(k_x, (B, IN_DIM), jnp.float32)

    ref = features @ weight.T + bias

    # 1) Exact f32 Pallas path (forced; the toy shape would normally take the fast path).
    params_f32 = init_classifier_params(weight, bias, compute_dtype=jnp.float32)
    scores = jax.block_until_ready(classifier_forward(features, params_f32, use_pallas=True))
    assert scores.shape == (B, NUM_CLASSES)
    assert jnp.allclose(scores, ref, atol=1e-5, rtol=1e-5)

    # 2) Default params (bf16 streaming); toy shape takes the jnp.dot fast path.
    params_bf16 = init_classifier_params(weight, bias)
    scores_fast = jax.block_until_ready(classifier_forward(features, params_bf16))
    assert jnp.allclose(scores_fast, ref, atol=2e-2, rtol=2e-2)

    # 3) Forced bf16-streaming Pallas path (single-K, scratch-free kernel).
    scores_bf16 = jax.block_until_ready(
        classifier_forward(features, params_bf16, use_pallas=True))
    assert jnp.allclose(scores_bf16, ref, atol=2e-2, rtol=2e-2)

    # 4) Slightly larger head: multi-tile class axis (megacore-splittable) and a
    #    2-step K reduction (exercises the accumulator + fused epilogue path).
    B2, K2, C2 = 64, 512, 384
    kx2, kw2, kb2 = jax.random.split(jax.random.PRNGKey(1), 3)
    w2 = jax.random.uniform(kw2, (C2, K2), jnp.float32, -0.05, 0.05)
    b2 = jax.random.uniform(kb2, (C2,), jnp.float32, -0.05, 0.05)
    x2 = jax.random.normal(kx2, (B2, K2), jnp.float32)
    params2 = init_classifier_params(w2, b2, block_k=256)   # -> Kp // tk == 2
    out2 = jax.block_until_ready(classifier_forward(x2, params2, use_pallas=True))
    ref2 = x2 @ w2.T + b2
    assert out2.shape == (B2, C2)
    assert jnp.allclose(out2, ref2, atol=5e-2, rtol=5e-2)

    print("KERNEL_OK")
</pallas_src>

<mosaic_0001>
module attributes {stable_mosaic.version = 11 : i64} {
  func.func @_linear_kernel_single_k(%arg0: i32, %arg1: i32, %arg2: i32, %arg3: memref<8x128xf32, #tpu.memory_space<vmem>>, %arg4: memref<128x128xf32, #tpu.memory_space<vmem>>, %arg5: memref<1x128xf32, #tpu.memory_space<vmem>>, %arg6: memref<8x128xf32, #tpu.memory_space<vmem>>) attributes {dimension_semantics = [#tpu.dimension_semantics<parallel>, #tpu.dimension_semantics<parallel>, #tpu.dimension_semantics<arbitrary>], iteration_bounds = array<i64: 1, 1, 1>, scalar_prefetch = 0 : i64, scratch_operands = 0 : i64, tpu.core_type = #tpu.core_type<tc>, window_params = [{transform_indices = @transform_0, window_bounds = array<i64: 8, 128>}, {transform_indices = @transform_1, window_bounds = array<i64: 128, 128>}, {transform_indices = @transform_2, window_bounds = array<i64: 1, 128>}, {transform_indices = @transform_3, window_bounds = array<i64: 8, 128>}]} {
    %c0 = arith.constant 0 : index
    %c0_0 = arith.constant 0 : index
    %0 = vector.load %arg3[%c0, %c0_0] : memref<8x128xf32, #tpu.memory_space<vmem>>, vector<8x128xf32>
    %c0_1 = arith.constant 0 : index
    %c0_2 = arith.constant 0 : index
    %1 = vector.load %arg4[%c0_1, %c0_2] : memref<128x128xf32, #tpu.memory_space<vmem>>, vector<128x128xf32>
    %cst = arith.constant dense<0.000000e+00> : vector<8x128xf32>
    %2 = tpu.matmul %0, %1, %cst {dimension_numbers = #tpu.dot_dimension_numbers<[1], [0], [0], [1], [0, 0, 1, 1], [], []>} : vector<8x128xf32>, vector<128x128xf32>, vector<8x128xf32> -> vector<8x128xf32>
    %c0_3 = arith.constant 0 : index
    %c0_4 = arith.constant 0 : index
    %3 = vector.load %arg5[%c0_3, %c0_4] : memref<1x128xf32, #tpu.memory_space<vmem>>, vector<1x128xf32>
    %4 = vector.broadcast %3 : vector<1x128xf32> to vector<8x128xf32>
    %5 = arith.addf %2, %4 : vector<8x128xf32>
    %c0_5 = arith.constant 0 : index
    %c0_6 = arith.constant 0 : index
    %6 = vector.load %arg6[%c0_5, %c0_6] : memref<8x128xf32, #tpu.memory_space<vmem>>, vector<8x128xf32>
    tpu.vector_store %arg6[%c0_5, %c0_6], %5 {strides = array<i32>} : memref<8x128xf32, #tpu.memory_space<vmem>>, vector<8x128xf32>,
    return
  }
  func.func @transform_0(%arg0: i32, %arg1: i32, %arg2: i32) -> (i32, i32) {
    %c0_i32 = arith.constant 0 : i32
    return %arg0, %arg2 : i32, i32
  }
  func.func @transform_1(%arg0: i32, %arg1: i32, %arg2: i32) -> (i32, i32) {
    %c0_i32 = arith.constant 0 : i32
    return %arg2, %arg1 : i32, i32
  }
  func.func @transform_2(%arg0: i32, %arg1: i32, %arg2: i32) -> (i32, i32) {
    %c0_i32 = arith.constant 0 : i32
    %c0_i32_0 = arith.constant 0 : i32
    return %c0_i32, %arg1 : i32, i32
  }
  func.func @transform_3(%arg0: i32, %arg1: i32, %arg2: i32) -> (i32, i32) {
    %c0_i32 = arith.constant 0 : i32
    return %arg0, %arg1 : i32, i32
  }
}

</mosaic_0001>

<bundles_post_ra>
// kernel: tpu_custom_call.1
= control target key start
LH: loop header
LB: loop body
LE: loop exit
PB: predicated region body
PF: predicated region fallthrough
CT: control target
= control target key end

     0   :  { %8 = vsyncpa [#allocation3], 0  ;;  %s317_s0 = inlined_call_operand.hbm [shape: f32[8,128], index: 0, kind: input, shape index: {}]   ;;  %s318_s1 = inlined_call_operand.hbm [shape: f32[128,128], index: 1, kind: input, shape index: {}]   ;;  %s319_s2 = inlined_call_operand.vmem [shape: f32[1,128], index: 2, kind: input, shape index: {}]   ;;  %s320_s3 = inlined_call_operand.hbm [shape: f32[8,128], index: 3, kind: output, shape index: {}]  }
   0x1   :  { %9 = vsyncpa [#allocation6], 0 }
   0x2   :  { %10 = vsyncpa [#allocation4], 0  ;;  %s278_s12 = smov [#allocation2]   ;;  %s279_s14 = smov [#allocation5]  }
   0x3   :  { %s17_s13 = sshll.u32 %s278_s12, 4  ;;  %s26_s15 = sshll.u32 %s279_s14, 4  ;;  %s18_s13 = int_to_ptr.vmem [resolvable:$true] %s17_s13  ;;  %s27_s15 = int_to_ptr.vmem [resolvable:$true] %s26_s15 }
   0x4   :  { %s220_s16 = scalar_lea.vmem %s18_s13, 128  ;;  %p225_p1 = scmp.lt.s32.totalorder %s18_s13, %s18_s13 }
   0x5   :  { %p221_p0 = scmp.ne.s32.totalorder %s18_s13, %s220_s16  ;;  %p226_p2 = scmp.lt.s32.totalorder %s220_s16, %s220_s16 }
   0x7   :  { %p227_p3 = por %p226_p2, %p225_p1 }
   0x9   :  { %p228_p4 = pnand %p227_p3, %p221_p0 }
   0xb   :  { %231 = shalt.err (!%p228_p4)
}
   0xc   :  { %20 = dma.hbm_to_vmem [thread:$0]  %s317_s0, 128, %s18_s13, [#allocation3]  }
   0xd   :  { %s240_s19 = scalar_lea.vmem %s27_s15, 2048  ;;  %p245_p6 = scmp.lt.s32.totalorder %s27_s15, %s27_s15 }
   0xe   :  { %p241_p5 = scmp.ne.s32.totalorder %s27_s15, %s240_s19  ;;  %p246_p7 = scmp.lt.s32.totalorder %s240_s19, %s240_s19 }
  0x10   :  { %p247_p8 = por %p246_p7, %p245_p6 }
  0x12   :  { %p248_p9 = pnand %p247_p8, %p241_p5 }
  0x14   :  { %251 = shalt.err (!%p248_p9)
}
  0x15   :  { %s280_s20 = smov 128   ;;  %s281_s21 = smov 8  }
  0x16   :  { %32 = dma.hbm_to_vmem [thread:$0]  %s318_s1, 2048, %s27_s15, [#allocation6], %s280_s20, %s280_s20, %s281_s21  }
  0x17   :  { %272 = dma.done.wait [#allocation3], 128  }
  0x18   :  { %273 = vsyncadd [#allocation3], 4294967168 }
  0x19   :  { %274 = dma.done.wait [#allocation6], 2048  }
  0x1a   :  { %275 = vsyncadd [#allocation6], 4294965248  ;;  %v282_v0 = vmov 0.0   ;;  %vm283_vm0 = vmmov 0   ;;  %v57_v1 = vld [vmem:[#allocation5 + $0x78] sm:$0xff]  ;;  %v56_v2 = vld [vmem:[#allocation5 + $0x70] sm:$0xff] }
  0x1b   :  { %170 = vmatprep.subr.mxu0 %v282_v0  ;;  %202 = vmatprep.mubr.msk.f32.mxu0 %vm283_vm0, %v282_v0  ;;  %v55_v3 = vld [vmem:[#allocation5 + $0x68] sm:$0xff]  ;;  %v54_v4 = vld [vmem:[#allocation5 + $0x60] sm:$0xff]  ;;  %v53_v5 = vld [vmem:[#allocation5 + $0x58] sm:$0xff]  ;;  %s284_s24 = smov [#allocation7]  }
  0x1c   :  { %171 = vmatpush3.msra.mxu0 %v57_v1  ;;  %v52_v6 = vld [vmem:[#allocation5 + $0x50] sm:$0xff]  ;;  %v51_v7 = vld [vmem:[#allocation5 + $0x48] sm:$0xff]  ;;  %v50_v8 = vld [vmem:[#allocation5 + $0x40] sm:$0xff]  ;;  %s142_s25 = sshll.u32 %s284_s24, 4  ;;  %s143_s25 = int_to_ptr.vmem [resolvable:$true] %s142_s25 }
  0x1d   :  { %172 = vmatprep.subr.mxu0 %v282_v0  ;;  %v49_v9 = vld [vmem:[#allocation5 + $0x38] sm:$0xff]  ;;  %v48_v10 = vld [vmem:[#allocation5 + $0x30] sm:$0xff]  ;;  %v47_v11 = vld [vmem:[#allocation5 + $0x28] sm:$0xff]  ;;  %s252_s26 = scalar_lea.vmem %s143_s25, 128  ;;  %p257_p11 = scmp.lt.s32.totalorder %s143_s25, %s143_s25 }
  0x1e   :  { %173 = vmatpush3.msra.mxu0 %v56_v2  ;;  %v46_v12 = vld [vmem:[#allocation5 + $0x20] sm:$0xff]  ;;  %v45_v13 = vld [vmem:[#allocation5 + $0x18] sm:$0xff]  ;;  %v44_v14 = vld [vmem:[#allocation5 + $0x10] sm:$0xff]  ;;  %p253_p10 = scmp.ne.s32.totalorder %s143_s25, %s252_s26  ;;  %p258_p12 = scmp.lt.s32.totalorder %s252_s26, %s252_s26 }
  0x1f   :  { %174 = vmatprep.subr.mxu0 %v282_v0  ;;  %v43_v15 = vld [vmem:[#allocation5 + $0x8] sm:$0xff]  ;;  %v42_v16 = vld [vmem:[#allocation5] sm:$0xff]  ;;  %v41_v17 = vld [vmem:[#allocation2] sm:$0xff] }
  0x20   :  { %175 = vmatpush3.msra.mxu0 %v55_v3  ;;  %v152_v18 = vld [vmem:[%s319_s2] ss:$0 sm:$0xff]  ;;  %p259_p13 = por %p258_p12, %p257_p11 }
  0x21   :  { %176 = vmatprep.subr.mxu0 %v282_v0 }
  0x22   :  { %177 = vmatpush3.msra.mxu0 %v54_v4  ;;  %p260_p0 = pnand %p259_p13, %p253_p10 }
  0x23   :  { %178 = vmatprep.subr.mxu0 %v282_v0 }
  0x24   :  { %179 = vmatpush3.msra.mxu0 %v53_v5 }
  0x25   :  { %180 = vmatprep.subr.mxu0 %v282_v0 }
  0x26   :  { %181 = vmatpush3.msra.mxu0 %v52_v6 }
  0x27   :  { %182 = vmatprep.subr.mxu0 %v282_v0 }
  0x28   :  { %183 = vmatpush3.msra.mxu0 %v51_v7 }
  0x29   :  { %184 = vmatprep.subr.mxu0 %v282_v0 }
  0x2a   :  { %185 = vmatpush3.msra.mxu0 %v50_v8 }
  0x2b   :  { %186 = vmatprep.subr.mxu0 %v282_v0 }
  0x2c   :  { %187 = vmatpush3.msra.mxu0 %v49_v9 }
  0x2d   :  { %188 = vmatprep.subr.mxu0 %v282_v0 }
  0x2e   :  { %189 = vmatpush3.msra.mxu0 %v48_v10 }
  0x2f   :  { %190 = vmatprep.subr.mxu0 %v282_v0 }
  0x30   :  { %191 = vmatpush3.msra.mxu0 %v47_v11 }
  0x31   :  { %192 = vmatprep.subr.mxu0 %v282_v0 }
  0x32   :  { %193 = vmatpush3.msra.mxu0 %v46_v12 }
  0x33   :  { %194 = vmatprep.subr.mxu0 %v282_v0 }
  0x34   :  { %195 = vmatpush3.msra.mxu0 %v45_v13 }
  0x35   :  { %196 = vmatprep.subr.mxu0 %v282_v0 }
  0x36   :  { %197 = vmatpush3.msra.mxu0 %v44_v14 }
  0x37   :  { %198 = vmatprep.subr.mxu0 %v282_v0 }
  0x38   :  { %199 = vmatpush3.msra.mxu0 %v43_v15 }
  0x39   :  { %200 = vmatprep.subr.mxu0 %v282_v0 }
  0x3a   :  { %201 = vmatpush3.msra.mxu0 %v42_v16 }
  0x3b   :  { %203 = vmatmul.mubr.f32.vlgmr.msra.gmra.mxu0 %v41_v17 }
  0xfb   :  { %v131_v19 = vpop.f32.mrf.mxu0 }
  0xfc   :  { %v132_v20 = vadd.f32 %v152_v18, %v131_v19 }
  0xfd   :  { %v204_v21 = vpop.f32.mrf.mxu0 }
  0xfe   :  { %135 = vst [vmem:[#allocation7] sm:$0xff] %v132_v20 }
  0xff   :  { %263 = shalt.err (!%p260_p0)
}
 0x100   :  { %145 = dma.vmem_to_hbm [thread:$0]  %s143_s25, 128, %s320_s3, [#allocation4]  }
 0x101   :  { %276 = dma.done.wait [#allocation4], 128  }
 0x102   :  { %277 = vsyncadd [#allocation4], 4294967168 }
 0x103   :  { %149 = vsyncpa [#allocation3], 1 }
 0x104   :  { %150 = vsyncpa [#allocation6], 1 }
 0x105   :  { %151 = vsyncpa [#allocation4], 1 }

</bundles_post_ra>
